<compile_context>
chip_gen: v7x
topology: tpu7x:2x2x1
jax: 0.10.0
libtpu: 0.0.40
codegen_flags: <defaults>
</compile_context>

<pallas_src>
import jax
import jax.numpy as jnp
from jax.experimental import pallas as pl
from jax.experimental.pallas import tpu as pltpu

_LANE = 128


def _sigmoid_kernel(x_ref, o_ref):
    x = x_ref[...]
    # bf16-native on bf16 inputs (v6e/v7x EUP is bf16); f32 otherwise
    # (f32 inputs: casts are no-ops; narrow floats get promoted, which v5e needs).
    compute_dtype = jnp.bfloat16 if x.dtype == jnp.bfloat16 else jnp.float32
    xc = x.astype(compute_dtype)
    # sigmoid(x) == 0.5 * tanh(0.5 * x) + 0.5  -> one EUP op + VPU fma.
    y = jnp.tanh(xc * 0.5) * 0.5 + 0.5
    o_ref[...] = y.astype(o_ref.dtype)


def sigmoid_pallas(x: jax.Array, *, min_pallas_elems: int = 64 * 1024) -> jax.Array:
    """Elementwise sigmoid via a Pallas TPU kernel (floating dtypes)."""
    # PyTorch errors on integer sigmoid; we fall back to XLA (returns float).
    if not jnp.issubdtype(x.dtype, jnp.floating):
        return jax.nn.sigmoid(x)

    n = x.size
    # Small-input fast path: launch overhead dwarfs the work; XLA's fused
    # elementwise op is strictly faster there.
    if n == 0 or n < min_pallas_elems:
        return jax.nn.sigmoid(x)

    orig_shape = x.shape
    dtype = x.dtype
    sublane = 16 if dtype == jnp.bfloat16 else 8  # packing multiple

    # Build a lane-dense (rows, 128) slab. Common case (conv feature maps):
    # n divisible by 128 -> pure reshape, no pad copy, no trailing slice.
    if n % _LANE == 0:
        rows = n // _LANE
        padded_n = n
        x2d = x.reshape(rows, _LANE)
    else:
        rows = pl.cdiv(pl.cdiv(n, _LANE), sublane) * sublane
        padded_n = rows * _LANE
        x2d = jnp.pad(jnp.ravel(x), (0, padded_n - n)).reshape(rows, _LANE)

    # Block size: ~2048 rows (1 MiB f32 / 0.5 MiB bf16) but keep >= ~8 grid
    # steps when the array is big enough, so double-buffering and v7x's two
    # TensorCores both have work to overlap. Ragged grid handles the tail.
    max_tile_rows = 2048
    min_steps = 8
    if rows >= min_steps * sublane:
        tile_rows = min(max_tile_rows, pl.cdiv(rows, min_steps))
        tile_rows = pl.cdiv(tile_rows, sublane) * sublane
    else:
        tile_rows = rows  # tiny slab: single block equal to full array dims
    grid = (pl.cdiv(rows, tile_rows),)

    itemsize = jnp.dtype(dtype).itemsize
    out2d = pl.pallas_call(
        _sigmoid_kernel,
        out_shape=jax.ShapeDtypeStruct((rows, _LANE), dtype),
        grid_spec=pl.GridSpec(
            grid=grid,
            in_specs=[pl.BlockSpec((tile_rows, _LANE), lambda i: (i, 0))],
            out_specs=pl.BlockSpec((tile_rows, _LANE), lambda i: (i, 0)),
        ),
        compiler_params=pltpu.CompilerParams(
            dimension_semantics=("parallel",),
        ),
        cost_estimate=pl.CostEstimate(
            flops=4 * n,
            transcendentals=n,
            bytes_accessed=2 * n * itemsize,
        ),
    )(x2d)

    if padded_n == n:
        return out2d.reshape(orig_shape)
    return out2d.reshape(padded_n)[:n].reshape(orig_shape)


class SigmoidPallas:
    """Mirror of tkdet.layers.activation.Sigmoid (inplace is a no-op in JAX)."""

    def __init__(self, inplace: bool = False):
        self.inplace = inplace  # functional semantics; result is identical

    def __call__(self, x):
        return sigmoid_pallas(x)


if __name__ == "__main__":
    key = jax.random.PRNGKey(0)
    x = jax.random.normal(key, (2, 4, 16, 16), dtype=jnp.float32)  # NCHW
    y_ref = jax.nn.sigmoid(x)

    # Force the Pallas kernel even at this small demo size.
    y = sigmoid_pallas(x, min_pallas_elems=0)
    y = jax.block_until_ready(y)
    assert y.shape == x.shape and y.dtype == x.dtype
    assert jnp.allclose(y, y_ref, atol=1e-6, rtol=1e-5), "mismatch vs reference (f32)"

    # Default module path (small input -> XLA fast path), same semantics.
    mod = SigmoidPallas(inplace=False)
    y2 = jax.block_until_ready(mod(x))
    assert jnp.allclose(y2, y_ref, atol=1e-6, rtol=1e-6), "mismatch vs reference (fast path)"

    # bf16 + non-128-divisible size: exercises pad path, ragged tiling and the
    # bf16-native compute path.
    xb = jax.random.normal(jax.random.PRNGKey(0), (3, 5, 7, 11), dtype=jnp.bfloat16)
    yb = jax.block_until_ready(sigmoid_pallas(xb, min_pallas_elems=0))
    assert yb.shape == xb.shape and yb.dtype == xb.dtype
    assert jnp.allclose(
        yb.astype(jnp.float32),
        jax.nn.sigmoid(xb.astype(jnp.float32)),
        atol=2e-2, rtol=2e-2,
    ), "mismatch vs reference (bf16)"

    print("KERNEL_OK")
</pallas_src>

<mosaic_0001>
module attributes {stable_mosaic.version = 11 : i64} {
  func.func @_sigmoid_kernel(%arg0: i32, %arg1: memref<16x128xf32, #tpu.memory_space<vmem>>, %arg2: memref<16x128xf32, #tpu.memory_space<vmem>>) attributes {dimension_semantics = [#tpu.dimension_semantics<parallel>], iteration_bounds = array<i64: 1>, scalar_prefetch = 0 : i64, scratch_operands = 0 : i64, tpu.core_type = #tpu.core_type<tc>, window_params = [{transform_indices = @transform_0, window_bounds = array<i64: 16, 128>}, {transform_indices = @transform_1, window_bounds = array<i64: 16, 128>}]} {
    %c0 = arith.constant 0 : index
    %c0_0 = arith.constant 0 : index
    %0 = vector.load %arg1[%c0, %c0_0] : memref<16x128xf32, #tpu.memory_space<vmem>>, vector<16x128xf32>
    %cst = arith.constant 5.000000e-01 : f32
    %1 = vector.broadcast %cst : f32 to vector<16x128xf32>
    %2 = arith.mulf %0, %1 : vector<16x128xf32>
    %3 = math.tanh %2 : vector<16x128xf32>
    %cst_1 = arith.constant 5.000000e-01 : f32
    %4 = vector.broadcast %cst_1 : f32 to vector<16x128xf32>
    %5 = arith.mulf %3, %4 : vector<16x128xf32>
    %cst_2 = arith.constant 5.000000e-01 : f32
    %6 = vector.broadcast %cst_2 : f32 to vector<16x128xf32>
    %7 = arith.addf %5, %6 : vector<16x128xf32>
    %c0_3 = arith.constant 0 : index
    %c0_4 = arith.constant 0 : index
    %8 = vector.load %arg2[%c0_3, %c0_4] : memref<16x128xf32, #tpu.memory_space<vmem>>, vector<16x128xf32>
    tpu.vector_store %arg2[%c0_3, %c0_4], %7 {strides = array<i32>} : memref<16x128xf32, #tpu.memory_space<vmem>>, vector<16x128xf32>,
    return
  }
  func.func @transform_0(%arg0: i32) -> (i32, i32) {
    %c0_i32 = arith.constant 0 : i32
    %c0_i32_0 = arith.constant 0 : i32
    return %arg0, %c0_i32 : i32, i32
  }
  func.func @transform_1(%arg0: i32) -> (i32, i32) {
    %c0_i32 = arith.constant 0 : i32
    %c0_i32_0 = arith.constant 0 : i32
    return %arg0, %c0_i32 : i32, i32
  }
}

</mosaic_0001>

<bundles_post_ra>
// kernel: tpu_custom_call.1
= control target key start
LH: loop header
LB: loop body
LE: loop exit
PB: predicated region body
PF: predicated region fallthrough
CT: control target
= control target key end

     0   :  { %6 = vsyncpa [#allocation3], 0  ;;  %s152_s0 = inlined_call_operand.hbm [shape: f32[16,128], index: 0, kind: input, shape index: {}]   ;;  %s153_s1 = inlined_call_operand.hbm [shape: f32[16,128], index: 1, kind: output, shape index: {}]  }
   0x1   :  { %7 = vsyncpa [#allocation4], 0  ;;  %s108_s6 = smov [#allocation2]   ;;  %s60_s10 = scalar_lea.hbm %s152_s0, 256 }
   0x2   :  { %s13_s7 = sshll.u32 %s108_s6, 4  ;;  %p61_p0 = scmp.ne.s32.totalorder %s152_s0, %s60_s10  ;;  %s14_s7 = int_to_ptr.vmem [resolvable:$true] %s13_s7 }
   0x3   :  { %p64_p1 = scmp.lt.u32.totalorder %s60_s10, %s152_s0 }
   0x5   :  { %p66_p2 = pnand %p64_p1, %p61_p0 }
   0x7   :  { %69 = shalt.err (!%p66_p2)
}
   0x8   :  { %s70_s15 = scalar_lea.vmem %s14_s7, 256  ;;  %p75_p4 = scmp.lt.s32.totalorder %s14_s7, %s14_s7 }
   0x9   :  { %p71_p3 = scmp.ne.s32.totalorder %s14_s7, %s70_s15  ;;  %p76_p5 = scmp.lt.s32.totalorder %s70_s15, %s70_s15 }
   0xb   :  { %p77_p6 = por %p76_p5, %p75_p4 }
   0xd   :  { %p78_p7 = pnand %p77_p6, %p71_p3 }
   0xf   :  { %81 = shalt.err (!%p78_p7)
}
  0x10   :  { %s109_s16 = smov 128   ;;  %s110_s17 = smov 8  }
  0x11   :  { %19 = dma.hbm_to_vmem [thread:$0]  %s152_s0, 256, %s14_s7, [#allocation3], %s109_s16, %s109_s16, %s110_s17  }
  0x12   :  { %104 = dma.done.wait [#allocation3], 256  }
  0x13   :  { %105 = vsyncadd [#allocation3], 4294967040  ;;  %v23_v0 = vld [vmem:[#allocation2] sm:$0xff]  ;;  %v24_v1 = vld [vmem:[#allocation2 + $0x8] sm:$0xff]  ;;  %s111_s20 = smov [#allocation5]  }
  0x14   :  { %v25_v2 = vmul.f32 0.5, %v23_v0  ;;  %v26_v3 = vmul.f32 0.5, %v24_v1  ;;  %s40_s21 = sshll.u32 %s111_s20, 4  ;;  %s41_s21 = int_to_ptr.vmem [resolvable:$true] %s40_s21 }
  0x15   :  { %s82_s0 = scalar_lea.vmem %s41_s21, 256  ;;  %p87_p9 = scmp.lt.s32.totalorder %s41_s21, %s41_s21 }
  0x16   :  { %56 = vtanh.f32 %v25_v2  ;;  %p83_p8 = scmp.ne.s32.totalorder %s41_s21, %s82_s0  ;;  %p88_p10 = scmp.lt.s32.totalorder %s82_s0, %s82_s0 }
  0x17   :  { %58 = vtanh.f32 %v26_v3 }
  0x18   :  { %p89_p11 = por %p88_p10, %p87_p9 }
  0x1a   :  { %p90_p12 = pnand %p89_p11, %p83_p8 }
  0x20   :  { %v57_v4 = vpop.eup %56 }
  0x21   :  { %v59_v5 = vpop.eup %58  ;;  %v29_v6 = vmul.f32 0.5, %v57_v4 }
  0x22   :  { %v30_v7 = vmul.f32 0.5, %v59_v5 }
  0x23   :  { %v31_v8 = vadd.f32 0.5, %v29_v6 }
  0x24   :  { %v32_v9 = vadd.f32 0.5, %v30_v7 }
  0x25   :  { %33 = vst [vmem:[#allocation5] sm:$0xff] %v31_v8 }
  0x26   :  { %34 = vst [vmem:[#allocation5 + $0x8] sm:$0xff] %v32_v9 }
  0x27   :  { %93 = shalt.err (!%p90_p12)
}
  0x28   :  { %s94_s24 = scalar_lea.hbm %s153_s1, 256 }
  0x29   :  { %p95_p13 = scmp.ne.s32.totalorder %s153_s1, %s94_s24  ;;  %p98_p0 = scmp.lt.u32.totalorder %s94_s24, %s153_s1 }
  0x2b   :  { %p100_p1 = pnand %p98_p0, %p95_p13 }
  0x2d   :  { %103 = shalt.err (!%p100_p1)
}
  0x2e   :  { %46 = dma.vmem_to_hbm [thread:$0]  %s41_s21, 256, %s153_s1, [#allocation4], %s109_s16, %s109_s16, %s110_s17  }
  0x2f   :  { %106 = dma.done.wait [#allocation4], 256  }
  0x30   :  { %107 = vsyncadd [#allocation4], 4294967040 }
  0x31   :  { %50 = vsyncpa [#allocation3], 1 }
  0x32   :  { %51 = vsyncpa [#allocation4], 1 }

</bundles_post_ra>
